<compile_context>
chip_gen: v7x
topology: tpu7x:2x2x1
jax: 0.10.0
libtpu: 0.0.40
codegen_flags: <defaults>
</compile_context>

<pallas_src>
import functools

import jax
import jax.numpy as jnp
from jax.experimental import pallas as pl
from jax.experimental.pallas import tpu as pltpu

IN_FEATURES = 205
OUT_FEATURES = 8

# Rows of x per grid step.  Padded x tile is tb x 256 lanes x 4 B, so 8192 rows
# = 8 MiB/buffer (16 MiB double-buffered); the (tb, 8) output tile lane-pads to
# 128, adding 2 x 4 MiB.  Total ~24 MiB, within the raised scoped-VMEM limit on
# v5e/v6e/v7x and large enough to keep per-step overhead <10% of the DMA time.
TILE_B = 8192


def bottlenet_kernel(x_ref, wt_ref, b_ref, o_ref):
    # x_ref: (tb, 205)   wt_ref: (205, 8)   b_ref: (1, 8)   o_ref: (tb, 8)
    # Large operand (x tile) feeds the MXU untransposed; W^T is tiny & resident.
    logits = jnp.dot(x_ref[...], wt_ref[...], preferred_element_type=jnp.float32)
    logits = logits + b_ref[...]                 # bias broadcast over batch rows

    # Dropout (inference mode) == identity.

    # Numerically stable softmax over the class axis, exact normalization.
    m = jnp.max(logits, axis=-1, keepdims=True)       # (tb, 1)
    e = jnp.exp(logits - m)                           # (tb, 8)
    denom = jnp.sum(e, axis=-1, keepdims=True)        # (tb, 1)
    o_ref[...] = (e / denom).astype(o_ref.dtype)


def _pick_tile(batch, tile_b):
    """Balanced batch tile: multiple of 8, >=2 grid steps for large batches."""
    if batch <= 256:
        return batch                      # single tile; block == full dim is legal
    n_steps = max(2, pl.cdiv(batch, tile_b))
    tb = pl.cdiv(batch, n_steps)
    tb = ((tb + 7) // 8) * 8              # (8, 128) sublane tiling constraint
    return min(tb, batch)


@functools.partial(jax.jit, static_argnames=("tile_b",))
def bottlenet_forward(x, w, b, *, tile_b=TILE_B):
    """x: (B, 205) f32, w: (8, 205) (PyTorch Linear layout), b: (8,) -> (B, 8)."""
    B = x.shape[0]
    tb = _pick_tile(B, tile_b)
    grid = (pl.cdiv(B, tb),)

    w_t = w.T                             # (205, 8): one-time 6.5 KiB transpose
    b_row = b.reshape(1, OUT_FEATURES)

    cost = pl.CostEstimate(
        flops=2 * B * IN_FEATURES * OUT_FEATURES,
        transcendentals=B * OUT_FEATURES,
        bytes_accessed=4 * (B * (IN_FEATURES + OUT_FEATURES)
                            + IN_FEATURES * OUT_FEATURES + OUT_FEATURES),
    )

    # Double-buffered x tile (205 -> 256 lanes) + double-buffered output tile
    # (8 -> 128 lanes) + resident params / headroom.
    vmem_bytes = 2 * tb * 256 * 4 + 2 * tb * 128 * 4 + (2 << 20)

    return pl.pallas_call(
        bottlenet_kernel,
        out_shape=jax.ShapeDtypeStruct((B, OUT_FEATURES), jnp.float32),
        grid=grid,
        in_specs=[
            pl.BlockSpec((tb, IN_FEATURES), lambda i: (i, 0)),             # x (pipelined)
            pl.BlockSpec((IN_FEATURES, OUT_FEATURES), lambda i: (0, 0)),   # W^T (resident)
            pl.BlockSpec((1, OUT_FEATURES), lambda i: (0, 0)),             # bias (resident)
        ],
        out_specs=pl.BlockSpec((tb, OUT_FEATURES), lambda i: (i, 0)),      # (B, 8) directly
        compiler_params=pltpu.CompilerParams(
            dimension_semantics=("parallel",),   # megacore-shard the batch axis (v7x)
            vmem_limit_bytes=max(vmem_bytes, 16 << 20),
        ),
        cost_estimate=cost,
    )(x, w_t, b_row)


def reference_forward(x, w, b):
    logits = x @ w.T + b[None, :]
    return jax.nn.softmax(logits, axis=1)


if __name__ == "__main__":
    key = jax.random.PRNGKey(0)
    kx, kw, kb = jax.random.split(key, 3)

    # Small smoke test matching the module's [batch, 205] -> [batch, 8] spec.
    batch = 2
    x = jax.random.normal(kx, (batch, IN_FEATURES), dtype=jnp.float32)
    w = jax.random.normal(kw, (OUT_FEATURES, IN_FEATURES), dtype=jnp.float32) * 0.05
    b = jax.random.normal(kb, (OUT_FEATURES,), dtype=jnp.float32) * 0.05

    out = jax.block_until_ready(bottlenet_forward(x, w, b))
    ref = reference_forward(x, w, b)
    assert out.shape == (batch, OUT_FEATURES)
    assert jnp.allclose(out, ref, atol=1e-4, rtol=1e-4), "mismatch vs reference (small batch)"
    assert jnp.allclose(jnp.sum(out, axis=1), 1.0, atol=1e-4), "softmax rows must sum to 1"

    # Multi-tile path: balanced tiles + partial trailing block (kept small so it
    # also runs quickly in interpret mode).
    batch2 = 1000
    x2 = jax.random.normal(kx, (batch2, IN_FEATURES), dtype=jnp.float32)
    out2 = jax.block_until_ready(bottlenet_forward(x2, w, b, tile_b=256))
    ref2 = reference_forward(x2, w, b)
    assert out2.shape == (batch2, OUT_FEATURES)
    assert jnp.allclose(out2, ref2, atol=1e-4, rtol=1e-4), "mismatch vs reference (tiled batch)"
    assert jnp.allclose(jnp.sum(out2, axis=1), 1.0, atol=1e-4), "softmax rows must sum to 1"

    print("KERNEL_OK")
</pallas_src>

<mosaic_0001>
module attributes {stable_mosaic.version = 11 : i64} {
  func.func @bottlenet_kernel(%arg0: i32, %arg1: memref<2x205xf32, #tpu.memory_space<vmem>>, %arg2: memref<205x8xf32, #tpu.memory_space<vmem>>, %arg3: memref<1x8xf32, #tpu.memory_space<vmem>>, %arg4: memref<2x8xf32, #tpu.memory_space<vmem>>) attributes {dimension_semantics = [#tpu.dimension_semantics<parallel>], iteration_bounds = array<i64: 1>, scalar_prefetch = 0 : i64, scratch_operands = 0 : i64, tpu.core_type = #tpu.core_type<tc>, window_params = [{transform_indices = @transform_0, window_bounds = array<i64: 2, 205>}, {pipeline_mode = #tpu.pipeline_mode<synchronous>, transform_indices = @transform_1, window_bounds = array<i64: 205, 8>}, {pipeline_mode = #tpu.pipeline_mode<synchronous>, transform_indices = @transform_2, window_bounds = array<i64: 1, 8>}, {transform_indices = @transform_3, window_bounds = array<i64: 2, 8>}]} {
    %c0 = arith.constant 0 : index
    %c0_0 = arith.constant 0 : index
    %0 = vector.load %arg1[%c0, %c0_0] : memref<2x205xf32, #tpu.memory_space<vmem>>, vector<2x205xf32>
    %c0_1 = arith.constant 0 : index
    %c0_2 = arith.constant 0 : index
    %1 = vector.load %arg2[%c0_1, %c0_2] : memref<205x8xf32, #tpu.memory_space<vmem>>, vector<205x8xf32>
    %cst = arith.constant dense<0.000000e+00> : vector<2x8xf32>
    %2 = tpu.matmul %0, %1, %cst {dimension_numbers = #tpu.dot_dimension_numbers<[1], [0], [0], [1], [0, 0, 1, 1], [], []>} : vector<2x205xf32>, vector<205x8xf32>, vector<2x8xf32> -> vector<2x8xf32>
    %c0_3 = arith.constant 0 : index
    %c0_4 = arith.constant 0 : index
    %3 = vector.load %arg3[%c0_3, %c0_4] : memref<1x8xf32, #tpu.memory_space<vmem>>, vector<1x8xf32>
    %4 = vector.broadcast %3 : vector<1x8xf32> to vector<2x8xf32>
    %5 = arith.addf %2, %4 : vector<2x8xf32>
    %cst_5 = arith.constant dense<0xFF800000> : vector<2xf32>
    %6 = vector.multi_reduction <maximumf>, %5, %cst_5 [1] : vector<2x8xf32> to vector<2xf32>
    %7 = vector.shape_cast %6 : vector<2xf32> to vector<2x1xf32>
    %8 = vector.broadcast %7 : vector<2x1xf32> to vector<2x8xf32>
    %9 = arith.subf %5, %8 : vector<2x8xf32>
    %10 = math.exp %9 : vector<2x8xf32>
    %cst_6 = arith.constant dense<0.000000e+00> : vector<2xf32>
    %11 = vector.multi_reduction <add>, %10, %cst_6 [1] : vector<2x8xf32> to vector<2xf32>
    %12 = vector.shape_cast %11 : vector<2xf32> to vector<2x1xf32>
    %13 = vector.broadcast %12 : vector<2x1xf32> to vector<2x8xf32>
    %14 = arith.divf %10, %13 : vector<2x8xf32>
    %c0_7 = arith.constant 0 : index
    %c0_8 = arith.constant 0 : index
    %15 = vector.load %arg4[%c0_7, %c0_8] : memref<2x8xf32, #tpu.memory_space<vmem>>, vector<2x8xf32>
    tpu.vector_store %arg4[%c0_7, %c0_8], %14 {strides = array<i32>} : memref<2x8xf32, #tpu.memory_space<vmem>>, vector<2x8xf32>,
    return
  }
  func.func @transform_0(%arg0: i32) -> (i32, i32) {
    %c0_i32 = arith.constant 0 : i32
    %c0_i32_0 = arith.constant 0 : i32
    return %arg0, %c0_i32 : i32, i32
  }
  func.func @transform_1(%arg0: i32) -> (i32, i32) {
    %c0_i32 = arith.constant 0 : i32
    %c0_i32_0 = arith.constant 0 : i32
    %c0_i32_1 = arith.constant 0 : i32
    return %c0_i32, %c0_i32_0 : i32, i32
  }
  func.func @transform_2(%arg0: i32) -> (i32, i32) {
    %c0_i32 = arith.constant 0 : i32
    %c0_i32_0 = arith.constant 0 : i32
    %c0_i32_1 = arith.constant 0 : i32
    return %c0_i32, %c0_i32_0 : i32, i32
  }
  func.func @transform_3(%arg0: i32) -> (i32, i32) {
    %c0_i32 = arith.constant 0 : i32
    %c0_i32_0 = arith.constant 0 : i32
    return %arg0, %c0_i32 : i32, i32
  }
}

</mosaic_0001>

<bundles_post_ra>
// kernel: bottlenet_forward.1
= control target key start
LH: loop header
LB: loop body
LE: loop exit
PB: predicated region body
PF: predicated region fallthrough
CT: control target
= control target key end

     0   :  { %v238_v3 = vmov 0.0|0.0   ;;  %vm59_vm0 = vcmask 629760   ;;  %s373_s0 = inlined_call_operand.vmem [shape: f32[2,205], index: 0, kind: input, shape index: {}]   ;;  %s374_s1 = inlined_call_operand.vmem [shape: f32[205,8], index: 1, kind: input, shape index: {}]   ;;  %s375_s2 = inlined_call_operand.vmem [shape: f32[1,8], index: 2, kind: input, shape index: {}]   ;;  %s376_s3 = inlined_call_operand.hbm [shape: f32[2,8], index: 3, kind: output, shape index: {}]  }
   0x1   :  { %v16_v0 = vld [vmem:[%s374_s1] sm:$0xff]  ;;  %v17_v1 = vld [vmem:[%s374_s1 + $0x8] sm:$0xff]  ;;  %v18_v2 = vld [vmem:[%s374_s1 + $0x10] sm:$0xff]  ;;  %167 = vmatprep.subr.bf16.mxu0 %v238_v3 }
   0x2   :  { %v168_v4 = vpack.c.bf16 %v17_v1, %v16_v0  ;;  %v19_v5 = vld [vmem:[%s374_s1 + $0x18] sm:$0xff]  ;;  %v20_v7 = vld [vmem:[%s374_s1 + $0x20] sm:$0xff]  ;;  %v21_v8 = vld [vmem:[%s374_s1 + $0x28] sm:$0xff] }
   0x3   :  { %v171_v6 = vpack.c.bf16 %v19_v5, %v18_v2  ;;  %v174_v9 = vpack.c.bf16 %v21_v8, %v20_v7  ;;  %v22_v10 = vld [vmem:[%s374_s1 + $0x30] sm:$0xff]  ;;  %v23_v11 = vld [vmem:[%s374_s1 + $0x38] sm:$0xff]  ;;  %v164_v12 = vld.sshfl [vmem:[%s373_s0] sm:$0x33 pattern:$0x76325410] }
   0x4   :  { %169 = vmatpush1.bf16.msra.mxu0 %v168_v4  ;;  %v57_v13 = vcombine.high %v164_v12, %v164_v12 }
   0x5   :  { %170 = vmatprep.subr.bf16.mxu0 %v238_v3 }
   0x8   :  { %172 = vmatpush1.bf16.msra.mxu0 %v171_v6 }
   0x9   :  { %173 = vmatprep.subr.bf16.mxu0 %v238_v3 }
   0xa   :  { %8 = vsyncpa [#allocation3], 0  ;;  %v177_v14 = vpack.c.bf16 %v23_v11, %v22_v10  ;;  %v24_v15 = vld [vmem:[%s374_s1 + $0x40] sm:$0xff]  ;;  %v25_v16 = vld [vmem:[%s374_s1 + $0x48] sm:$0xff]  ;;  %166 = vmatprep.mubr.msk.f32.mxu0 %vm59_vm0, %v57_v13  ;;  %vm62_vm1 = vcmask 1044480   ;;  %vm239_vm2 = vmmov 1  }
   0xb   :  { %v180_v17 = vpack.c.bf16 %v25_v16, %v24_v15  ;;  %v26_v18 = vld [vmem:[%s374_s1 + $0x50] sm:$0xff]  ;;  %v27_v19 = vld [vmem:[%s374_s1 + $0x58] sm:$0xff]  ;;  %v28_v21 = vld [vmem:[%s374_s1 + $0x60] sm:$0xff]  ;;  %vm136_vm4 = vcmask 58368  }
   0xc   :  { %175 = vmatpush1.bf16.msra.mxu0 %v174_v9  ;;  %v183_v20 = vpack.c.bf16 %v27_v19, %v26_v18  ;;  %v29_v22 = vld [vmem:[%s374_s1 + $0x68] sm:$0xff]  ;;  %v30_v24 = vld [vmem:[%s374_s1 + $0x70] sm:$0xff]  ;;  %v31_v25 = vld [vmem:[%s374_s1 + $0x78] sm:$0xff] }
   0xd   :  { %176 = vmatprep.subr.bf16.mxu0 %v238_v3  ;;  %v186_v23 = vpack.c.bf16 %v29_v22, %v28_v21  ;;  %v189_v26 = vpack.c.bf16 %v31_v25, %v30_v24  ;;  %v32_v27 = vld [vmem:[%s374_s1 + $0x80] sm:$0xff]  ;;  %v33_v28 = vld [vmem:[%s374_s1 + $0x88] sm:$0xff]  ;;  %v34_v30 = vld [vmem:[%s374_s1 + $0x90] sm:$0xff] }
   0xe   :  { %v192_v29 = vpack.c.bf16 %v33_v28, %v32_v27  ;;  %v35_v31 = vld [vmem:[%s374_s1 + $0x98] sm:$0xff]  ;;  %v36_v33 = vld [vmem:[%s374_s1 + $0xa0] sm:$0xff]  ;;  %v37_v34 = vld [vmem:[%s374_s1 + $0xa8] sm:$0xff] }
   0xf   :  { %v195_v32 = vpack.c.bf16 %v35_v31, %v34_v30  ;;  %v198_v35 = vpack.c.bf16 %v37_v34, %v36_v33  ;;  %v38_v36 = vld [vmem:[%s374_s1 + $0xb0] sm:$0xff]  ;;  %v39_v37 = vld [vmem:[%s374_s1 + $0xb8] sm:$0xff]  ;;  %v40_v39 = vld [vmem:[%s374_s1 + $0xc0] sm:$0xff] }
  0x10   :  { %178 = vmatpush1.bf16.msra.mxu0 %v177_v14  ;;  %v201_v38 = vpack.c.bf16 %v39_v37, %v38_v36  ;;  %v41_v40 = vld [vmem:[%s374_s1 + $0xc8] sm:$0x1f]  ;;  %vm205_vm3 = vmpackc.low %vm62_vm1, %vm239_vm2  ;;  %v163_v42 = vld [vmem:[%s375_s2] ss:$0 sm:$0xff]  ;;  %s240_s1 = smov [#allocation2]  }
  0x11   :  { %179 = vmatprep.subr.bf16.mxu0 %v238_v3  ;;  %v204_v41 = vpack.c.bf16 %v41_v40, %v40_v39  ;;  %s155_s12 = sshll.u32 %s240_s1, 4  ;;  %s156_s12 = int_to_ptr.vmem [resolvable:$true] %s155_s12 }
  0x12   :  { %s214_s2 = scalar_lea.vmem %s156_s12, 32  ;;  %p219_p1 = scmp.lt.s32.totalorder %s156_s12, %s156_s12 }
  0x13   :  { %p215_p0 = scmp.ne.s32.totalorder %s156_s12, %s214_s2  ;;  %p220_p2 = scmp.lt.s32.totalorder %s214_s2, %s214_s2 }
  0x14   :  { %181 = vmatpush1.bf16.msra.mxu0 %v180_v17 }
  0x15   :  { %182 = vmatprep.subr.bf16.mxu0 %v238_v3  ;;  %p221_p3 = por %p220_p2, %p219_p1 }
  0x17   :  { %p222_p4 = pnand %p221_p3, %p215_p0 }
  0x18   :  { %184 = vmatpush1.bf16.msra.mxu0 %v183_v20 }
  0x19   :  { %185 = vmatprep.subr.bf16.mxu0 %v238_v3 }
  0x1c   :  { %187 = vmatpush1.bf16.msra.mxu0 %v186_v23 }
  0x1d   :  { %188 = vmatprep.subr.bf16.mxu0 %v238_v3 }
  0x20   :  { %190 = vmatpush1.bf16.msra.mxu0 %v189_v26 }
  0x21   :  { %191 = vmatprep.subr.bf16.mxu0 %v238_v3 }
  0x24   :  { %193 = vmatpush1.bf16.msra.mxu0 %v192_v29 }
  0x25   :  { %194 = vmatprep.subr.bf16.mxu0 %v238_v3 }
  0x28   :  { %196 = vmatpush1.bf16.msra.mxu0 %v195_v32 }
  0x29   :  { %197 = vmatprep.subr.bf16.mxu0 %v238_v3 }
  0x2c   :  { %199 = vmatpush1.bf16.msra.mxu0 %v198_v35 }
  0x2d   :  { %200 = vmatprep.subr.bf16.mxu0 %v238_v3 }
  0x30   :  { %202 = vmatpush1.bf16.msra.mxu0 %v201_v38 }
  0x31   :  { %203 = vmatprep.subr.bf16.mxu0 %v238_v3 }
  0x34   :  { %206 = vmatpush1.bf16.msk.msra.mxu0 %vm205_vm3, %v204_v41 }
  0x37   :  { %131 = vmatmul.mubr.f32.vlgmr.msra.gmra.mrb[0].mxu0 %v164_v12 }
 0x10a   :  { %v132_v43 = vpop.f32.mrb[0].mxu0 }
 0x10b   :  { %v133_v44 = vadd.f32 %v163_v42, %v132_v43  ;;  %v134_v45 = vpop.f32.mrb[1].mxu0 }
 0x10d   :  { %v137_v46 = vsel %vm136_vm4, %v133_v44, -inf }
 0x10e   :  { %138 = vmax.xlane.f32.xlu0 %v137_v46 }
 0x19b   :  { %v139_v47 = vpop.xlane.xlu0 %138 }
 0x19c   :  { %v140_v48 = vsub.f32 %v133_v44, %v139_v47 }
 0x19e   :  { %v141_v49 = vmul.f32 1.442695, %v140_v48 }
 0x1a0   :  { %210 = vpow2.f32 %v141_v49 }
 0x1aa   :  { %v211_v50 = vpop.eup %210 }
 0x1ab   :  { %v143_v51 = vsel %vm136_vm4, %v211_v50, 0.0 }
 0x1ac   :  { %144 = vadd.xlane.f32.xlu0 %v143_v51 }
 0x239   :  { %v145_v52 = vpop.xlane.xlu0 %144 }
 0x23a   :  { %212 = vrcp.f32 %v145_v52 }
 0x244   :  { %v213_v53 = vpop.eup %212 }
 0x245   :  { %v147_v54 = vmul.f32 %v213_v53, %v211_v50 }
 0x247   :  { %148 = vst.msk [vmem:[#allocation2] sm:$0x3] %vm136_vm4, %v147_v54 }
 0x248   :  { %225 = shalt.err (!%p222_p4)
}
 0x249   :  { %s226_s15 = scalar_lea.hbm %s376_s3, 32 }
 0x24a   :  { %p227_p5 = scmp.ne.s32.totalorder %s376_s3, %s226_s15  ;;  %p230_p6 = scmp.lt.u32.totalorder %s226_s15, %s376_s3 }
 0x24c   :  { %p232_p7 = pnand %p230_p6, %p227_p5 }
 0x24e   :  { %235 = shalt.err (!%p232_p7)
}
 0x24f   :  { %158 = dma.vmem_to_hbm [thread:$0]  %s156_s12, 32, %s376_s3, [#allocation3]  }
 0x250   :  { %236 = dma.done.wait [#allocation3], 32  }
 0x251   :  { %237 = vsyncadd [#allocation3], 4294967264 }
 0x252   :  { %162 = vsyncpa [#allocation3], 1 }

</bundles_post_ra>
